<compile_context>
chip_gen: v6e
topology: v6e:2x2x1
jax: 0.10.0
libtpu: 0.0.40
codegen_flags: <defaults>
</compile_context>

<pallas_src>
import functools

import jax
import jax.numpy as jnp
from jax import lax
from jax.experimental import pallas as pl
from jax.experimental.pallas import tpu as pltpu


# ----------------------------- configuration --------------------------------
INPUT_DIMS = [1, 3, 1, 4]          # per-feature output dims (d>1 -> categorical)
N_FEATURES = len(INPUT_DIMS)       # encoder input dim (as in the PyTorch code)
RECON_DIM = sum(INPUT_DIMS)        # decoder output dim (= 9)
ENC_HIDDEN = [32, 32]              # encoder_hidden_layers
DEC_HIDDEN = [32, 32]              # decoder_hidden_layers
EMBEDDING = 16                     # embedding_size
HID = 32                           # common lane width of all packed weight blocks
BATCH = 8
GUMBEL_TAU = 1.0                   # gumbel-softmax temperature (soft samples)

NF_PAD = 16                        # encoder input zero-padded to a bf16 sublane tile

# Packed activation slab layout: [x (0:16) | eps (16:32) | gumbel (32:41) | pad]
OFF_X = 0
OFF_EPS = NF_PAD                   # 16
OFF_GUM = NF_PAD + EMBEDDING       # 32
ACT_W = 48

# Row offsets of each weight block inside the packed (W_ROWS, HID) bf16 slab.
# Every offset and length is a multiple of 16 -> static ref slices stay
# bf16 (16,128)-tile aligned (no sublane-shift copies).
ROW_WE0 = 0
ROW_WE1 = ROW_WE0 + NF_PAD               # 16
ROW_WEO = ROW_WE1 + ENC_HIDDEN[0]        # 48
ROW_WML = ROW_WEO + ENC_HIDDEN[1]        # 80   fused mu|logvar head (32 -> 2*EMBEDDING)
ROW_WD0 = ROW_WML + ENC_HIDDEN[-1]       # 112
ROW_WD1 = ROW_WD0 + EMBEDDING            # 128
ROW_WDO = ROW_WD1 + DEC_HIDDEN[0]        # 160  (output cols padded 9 -> 32)
W_ROWS = ROW_WDO + DEC_HIDDEN[1]         # 192

# Bias rows in the packed (8, HID) f32 slab.
B_E0, B_E1, B_EO, B_ML, B_D0, B_D1, B_DO = range(7)
B_ROWS = 8

# Combined output: [mu | logvar | recon]
OUT_W = 2 * EMBEDDING + RECON_DIM        # 41


# ------------------------------- kernel -------------------------------------
def _vae_kernel(input_dims, act_ref, w_ref, b_ref, out_ref):
    f32 = jnp.float32
    bf16 = jnp.bfloat16
    D = sum(input_dims)
    E = EMBEDDING

    def dense(h, row0, nrows, bias_row):
        # bf16 MXU inputs, f32 accumulation; static tile-aligned weight slice.
        w = w_ref[row0:row0 + nrows, :]
        acc = jnp.dot(h.astype(bf16), w, preferred_element_type=f32)
        return acc + b_ref[bias_row:bias_row + 1, :]

    relu = lambda t: jnp.maximum(t, 0.0)

    # unpack the single activation slab
    x = act_ref[:, OFF_X:OFF_X + NF_PAD]
    eps = act_ref[:, OFF_EPS:OFF_EPS + E]
    gum = act_ref[:, OFF_GUM:OFF_GUM + D]

    # ----- encoder MLP (hidden layers + per-unit-relu output head) -----
    # dropout is identity in eval mode.
    h = relu(dense(x, ROW_WE0, NF_PAD, B_E0))
    h = relu(dense(h, ROW_WE1, ENC_HIDDEN[0], B_E1))
    h = relu(dense(h, ROW_WEO, ENC_HIDDEN[1], B_EO))

    # ----- fused mu | logvar head (single matmul, split by lane slice) -----
    mulv = dense(h, ROW_WML, ENC_HIDDEN[-1], B_ML)        # (tb, 2E)
    mu = mulv[:, :E]
    logvar = jnp.clip(mulv[:, E:2 * E], -30.0, 20.0)

    # ----- reparameterize -----
    z = mu + eps * jnp.exp(0.5 * logvar)

    # ----- decoder MLP -----
    d = relu(dense(z, ROW_WD0, E, B_D0))
    d = relu(dense(d, ROW_WD1, DEC_HIDDEN[0], B_D1))
    logits = dense(d, ROW_WDO, DEC_HIDDEN[1], B_DO)[:, :D]   # padded cols dropped

    # ----- per-slice heads, computed full-width (lane-dense epilogue) -----
    # gumbel-softmax over dim>1 segments (per-segment max => denom >= 1, no
    # NaN from underflow), tanh over dim==1 segments.
    col = lax.broadcasted_iota(jnp.int32, (1, D), 1)
    g = (logits + gum) * (1.0 / GUMBEL_TAU)

    cat_mask = jnp.zeros((1, D), jnp.bool_)
    soft = jnp.zeros_like(g)
    start = 0
    for dim in input_dims:           # static python loop over segments
        if dim > 1:
            in_seg = (col >= start) & (col < start + dim)
            gmax = jnp.max(jnp.where(in_seg, g, -jnp.inf), axis=-1, keepdims=True)
            es = jnp.exp(jnp.where(in_seg, g - gmax, -jnp.inf))   # exactly 0 outside seg
            ssum = jnp.sum(es, axis=-1, keepdims=True)            # >= 1 by construction
            soft = soft + es * pl.reciprocal(ssum, approx=True)   # EUP, not VALU divide
            cat_mask = cat_mask | in_seg
        start += dim

    recon = jnp.where(cat_mask, soft, jnp.tanh(logits))

    # ----- combined output: [mu | logvar | recon] -----
    # mu/logvar stored straight from mulv at their natural lane positions
    # (single lane-aligned 32-wide store); clip applied only to the logvar half.
    lane2e = lax.broadcasted_iota(jnp.int32, (1, 2 * E), 1)
    mulv_out = jnp.where(lane2e >= E, jnp.clip(mulv, -30.0, 20.0), mulv)
    out_ref[:, :2 * E] = mulv_out
    out_ref[:, 2 * E:2 * E + D] = recon


# ------------------------------- wrapper -------------------------------------
def vae_forward(x, w_pack, b_pack, eps, gumbel_noise, *, tb=None):
    """x: (B, N_FEATURES) f32 -> (recon (B,RECON_DIM), mu (B,E), logvar (B,E))."""
    B0 = x.shape[0]
    E = EMBEDDING

    def _pad_cols(a, w):
        return a if a.shape[1] == w else jnp.pad(a, ((0, 0), (0, w - a.shape[1])))

    # Single contiguous activation slab: [x_pad | eps | gumbel_pad] -> one DMA.
    act = jnp.concatenate(
        [_pad_cols(x, NF_PAD), eps, _pad_cols(gumbel_noise, ACT_W - OFF_GUM)], axis=1)

    # Pad batch rows to a multiple of 8 so any B works (remainder rows are junk
    # compute on zero inputs, sliced off below).
    B = max(8, ((B0 + 7) // 8) * 8)
    if B != B0:
        act = jnp.pad(act, ((0, B - B0), (0, 0)))

    if tb is None:
        if B >= 16:
            # At least 2 grid steps (v7x has 2 TensorCores), capped at 256 rows
            # to keep the ~8 live (tb, <=32) epilogue temporaries in-vreg.
            tb = min(256, (B // 2 // 8) * 8)
            while tb > 8 and B % tb != 0:
                tb -= 8
            tb = max(tb, 8)
        else:
            tb = B
    assert B % tb == 0 and (tb == B or tb % 8 == 0)

    def rows(width):
        return pl.BlockSpec((tb, width), lambda i: (i, 0))

    def whole(a):
        return pl.BlockSpec(a.shape, lambda i: (0, 0))    # resident across the grid

    # Advisory cost estimate (kernel is overhead/latency bound; this just helps
    # XLA schedule around the call).
    flops_per_row = 2 * HID * (NF_PAD + ENC_HIDDEN[0] + ENC_HIDDEN[1]
                               + ENC_HIDDEN[-1] + EMBEDDING
                               + DEC_HIDDEN[0] + DEC_HIDDEN[1])
    cost = pl.CostEstimate(
        flops=B * flops_per_row,
        transcendentals=B * (EMBEDDING + 2 * RECON_DIM + 2 * len(INPUT_DIMS)),
        bytes_accessed=B * (ACT_W + OUT_W) * 4 + w_pack.size * 2 + b_pack.size * 4)

    out = pl.pallas_call(
        functools.partial(_vae_kernel, tuple(INPUT_DIMS)),
        out_shape=jax.ShapeDtypeStruct((B, OUT_W), jnp.float32),
        grid=(B // tb,),
        in_specs=[rows(ACT_W), whole(w_pack), whole(b_pack)],
        out_specs=rows(OUT_W),
        compiler_params=pltpu.CompilerParams(
            dimension_semantics=("parallel",)),
        cost_estimate=cost,
    )(act, w_pack, b_pack)

    mu = out[:B0, :E]
    logvar = out[:B0, E:2 * E]
    recon = out[:B0, 2 * E:2 * E + RECON_DIM]
    return recon, mu, logvar


# --------------------------- parameter creation ------------------------------
def init_params(key):
    def dense(key, fan_in, fan_out):
        kw, kb = jax.random.split(key)
        scale = 1.0 / jnp.sqrt(jnp.float32(fan_in))
        w = jax.random.uniform(kw, (fan_in, fan_out), jnp.float32, -scale, scale)
        b = jax.random.uniform(kb, (1, fan_out), jnp.float32, -scale, scale)
        return w, b

    keys = jax.random.split(key, 8)
    p = {}
    # encoder: N_FEATURES -> 32 -> 32 -> 32 (output head)
    p["we0"], p["be0"] = dense(keys[0], N_FEATURES, ENC_HIDDEN[0])
    p["we1"], p["be1"] = dense(keys[1], ENC_HIDDEN[0], ENC_HIDDEN[1])
    p["weo"], p["beo"] = dense(keys[2], ENC_HIDDEN[1], ENC_HIDDEN[-1])
    # mu / logvar heads
    p["wmu"], p["bmu"] = dense(keys[3], ENC_HIDDEN[-1], EMBEDDING)
    p["wlv"], p["blv"] = dense(keys[4], ENC_HIDDEN[-1], EMBEDDING)
    # decoder: EMBEDDING -> 32 -> 32 -> RECON_DIM (per-slice activation head)
    p["wd0"], p["bd0"] = dense(keys[5], EMBEDDING, DEC_HIDDEN[0])
    p["wd1"], p["bd1"] = dense(keys[6], DEC_HIDDEN[0], DEC_HIDDEN[1])
    p["wdo"], p["bdo"] = dense(keys[7], DEC_HIDDEN[1], RECON_DIM)
    return p


def pack_params(p):
    """Pack all weights into one bf16 (W_ROWS, HID) slab and biases into (8, HID) f32."""
    W = jnp.zeros((W_ROWS, HID), jnp.float32)
    W = W.at[ROW_WE0:ROW_WE0 + N_FEATURES, :].set(p["we0"])
    W = W.at[ROW_WE1:ROW_WE1 + ENC_HIDDEN[0], :].set(p["we1"])
    W = W.at[ROW_WEO:ROW_WEO + ENC_HIDDEN[1], :].set(p["weo"])
    W = W.at[ROW_WML:ROW_WML + ENC_HIDDEN[-1], :].set(
        jnp.concatenate([p["wmu"], p["wlv"]], axis=1))
    W = W.at[ROW_WD0:ROW_WD0 + EMBEDDING, :].set(p["wd0"])
    W = W.at[ROW_WD1:ROW_WD1 + DEC_HIDDEN[0], :].set(p["wd1"])
    W = W.at[ROW_WDO:ROW_WDO + DEC_HIDDEN[1], :RECON_DIM].set(p["wdo"])
    W = W.astype(jnp.bfloat16)

    Bp = jnp.zeros((B_ROWS, HID), jnp.float32)
    Bp = Bp.at[B_E0, :ENC_HIDDEN[0]].set(p["be0"][0])
    Bp = Bp.at[B_E1, :ENC_HIDDEN[1]].set(p["be1"][0])
    Bp = Bp.at[B_EO, :ENC_HIDDEN[-1]].set(p["beo"][0])
    Bp = Bp.at[B_ML, :2 * EMBEDDING].set(
        jnp.concatenate([p["bmu"][0], p["blv"][0]], axis=0))
    Bp = Bp.at[B_D0, :DEC_HIDDEN[0]].set(p["bd0"][0])
    Bp = Bp.at[B_D1, :DEC_HIDDEN[1]].set(p["bd1"][0])
    Bp = Bp.at[B_DO, :RECON_DIM].set(p["bdo"][0])
    return W, Bp


# ----------------------- pure-JAX reference (for checking) -------------------
def vae_reference(x, p, eps, gumbel_noise):
    """Matches the kernel math (bf16 weights, f32 accumulation)."""
    bf16 = jnp.bfloat16
    f32 = jnp.float32

    def dense(h, w, b):
        return jnp.dot(h.astype(bf16), w.astype(bf16),
                       preferred_element_type=f32) + b

    relu = lambda t: jnp.maximum(t, 0.0)
    h = relu(dense(x, p["we0"], p["be0"]))
    h = relu(dense(h, p["we1"], p["be1"]))
    h = relu(dense(h, p["weo"], p["beo"]))
    mu = dense(h, p["wmu"], p["bmu"])
    logvar = jnp.clip(dense(h, p["wlv"], p["blv"]), -30.0, 20.0)
    z = mu + eps * jnp.exp(0.5 * logvar)
    d = relu(dense(z, p["wd0"], p["bd0"]))
    d = relu(dense(d, p["wd1"], p["bd1"]))
    logits = dense(d, p["wdo"], p["bdo"])

    outs = []
    start = 0
    for dim in INPUT_DIMS:
        seg = logits[:, start:start + dim]
        if dim > 1:
            gseg = (seg + gumbel_noise[:, start:start + dim]) / GUMBEL_TAU
            outs.append(jax.nn.softmax(gseg, axis=-1))
        else:
            outs.append(jnp.tanh(seg))
        start += dim
    return jnp.concatenate(outs, axis=1), mu, logvar


# ---------------------------------- main -------------------------------------
if __name__ == "__main__":
    key = jax.random.PRNGKey(0)
    k_param, k_x, k_eps, k_gum = jax.random.split(key, 4)

    params = init_params(k_param)
    w_pack, b_pack = pack_params(params)

    x = jax.random.normal(k_x, (BATCH, N_FEATURES), jnp.float32)
    # reparameterization noise (torch.randn_like(std))
    eps = jax.random.normal(k_eps, (BATCH, EMBEDDING), jnp.float32)
    # gumbel noise for the gumbel_softmax decoder heads
    u = jax.random.uniform(k_gum, (BATCH, RECON_DIM), jnp.float32, 1e-6, 1.0 - 1e-6)
    gumbel_noise = -jnp.log(-jnp.log(u))

    # TODO(synk): dropout in the MLPs is treated as identity (inference mode);
    # hard (straight-through) gumbel-softmax is not implemented, soft samples only.
    recon, mu, logvar = vae_forward(x, w_pack, b_pack, eps, gumbel_noise)
    jax.block_until_ready((recon, mu, logvar))

    assert recon.shape == (BATCH, RECON_DIM)
    assert mu.shape == (BATCH, EMBEDDING)
    assert logvar.shape == (BATCH, EMBEDDING)
    assert bool(jnp.all(jnp.isfinite(recon)))
    assert bool(jnp.all(jnp.isfinite(mu))) and bool(jnp.all(jnp.isfinite(logvar)))

    recon_r, mu_r, logvar_r = vae_reference(x, params, eps, gumbel_noise)
    assert bool(jnp.allclose(mu, mu_r, atol=2e-2, rtol=2e-2))
    assert bool(jnp.allclose(logvar, logvar_r, atol=2e-2, rtol=2e-2))
    assert bool(jnp.allclose(recon, recon_r, atol=2e-2, rtol=2e-2))

    print("KERNEL_OK")
</pallas_src>

<mosaic_0001>
module attributes {stable_mosaic.version = 11 : i64} {
  func.func @_vae_kernel(%arg0: i32, %arg1: memref<8x48xf32, #tpu.memory_space<vmem>>, %arg2: memref<192x32xbf16, #tpu.memory_space<vmem>>, %arg3: memref<8x32xf32, #tpu.memory_space<vmem>>, %arg4: memref<8x41xf32, #tpu.memory_space<vmem>>) attributes {dimension_semantics = [#tpu.dimension_semantics<parallel>], iteration_bounds = array<i64: 1>, scalar_prefetch = 0 : i64, scratch_operands = 0 : i64, tpu.core_type = #tpu.core_type<tc>, window_params = [{transform_indices = @transform_0, window_bounds = array<i64: 8, 48>}, {pipeline_mode = #tpu.pipeline_mode<synchronous>, transform_indices = @transform_1, window_bounds = array<i64: 192, 32>}, {pipeline_mode = #tpu.pipeline_mode<synchronous>, transform_indices = @transform_2, window_bounds = array<i64: 8, 32>}, {transform_indices = @transform_3, window_bounds = array<i64: 8, 41>}]} {
    %c0 = arith.constant 0 : index
    %c0_0 = arith.constant 0 : index
    %0 = vector.load %arg1[%c0, %c0_0] : memref<8x48xf32, #tpu.memory_space<vmem>>, vector<8x16xf32>
    %c0_1 = arith.constant 0 : index
    %c16 = arith.constant 16 : index
    %1 = vector.load %arg1[%c0_1, %c16] : memref<8x48xf32, #tpu.memory_space<vmem>>, vector<8x16xf32>
    %c0_2 = arith.constant 0 : index
    %c32 = arith.constant 32 : index
    %2 = vector.load %arg1[%c0_2, %c32] : memref<8x48xf32, #tpu.memory_space<vmem>>, vector<8x9xf32>
    %c0_3 = arith.constant 0 : index
    %c0_4 = arith.constant 0 : index
    %3 = vector.load %arg2[%c0_3, %c0_4] : memref<192x32xbf16, #tpu.memory_space<vmem>>, vector<16x32xbf16>
    %4 = arith.truncf %0 : vector<8x16xf32> to vector<8x16xbf16>
    %cst = arith.constant dense<0.000000e+00> : vector<8x32xf32>
    %5 = tpu.matmul %4, %3, %cst {dimension_numbers = #tpu.dot_dimension_numbers<[1], [0], [0], [1], [0, 0, 1, 1], [], []>} : vector<8x16xbf16>, vector<16x32xbf16>, vector<8x32xf32> -> vector<8x32xf32>
    %c0_5 = arith.constant 0 : index
    %c0_6 = arith.constant 0 : index
    %6 = vector.load %arg3[%c0_5, %c0_6] : memref<8x32xf32, #tpu.memory_space<vmem>>, vector<1x32xf32>
    %7 = vector.broadcast %6 : vector<1x32xf32> to vector<8x32xf32>
    %8 = arith.addf %5, %7 : vector<8x32xf32>
    %cst_7 = arith.constant 0.000000e+00 : f32
    %9 = vector.broadcast %cst_7 : f32 to vector<8x32xf32>
    %10 = arith.maximumf %8, %9 : vector<8x32xf32>
    %c16_8 = arith.constant 16 : index
    %c0_9 = arith.constant 0 : index
    %11 = vector.load %arg2[%c16_8, %c0_9] : memref<192x32xbf16, #tpu.memory_space<vmem>>, vector<32x32xbf16>
    %12 = arith.truncf %10 : vector<8x32xf32> to vector<8x32xbf16>
    %cst_10 = arith.constant dense<0.000000e+00> : vector<8x32xf32>
    %13 = tpu.matmul %12, %11, %cst_10 {dimension_numbers = #tpu.dot_dimension_numbers<[1], [0], [0], [1], [0, 0, 1, 1], [], []>} : vector<8x32xbf16>, vector<32x32xbf16>, vector<8x32xf32> -> vector<8x32xf32>
    %c1 = arith.constant 1 : index
    %c0_11 = arith.constant 0 : index
    %14 = vector.load %arg3[%c1, %c0_11] : memref<8x32xf32, #tpu.memory_space<vmem>>, vector<1x32xf32>
    %15 = vector.broadcast %14 : vector<1x32xf32> to vector<8x32xf32>
    %16 = arith.addf %13, %15 : vector<8x32xf32>
    %cst_12 = arith.constant 0.000000e+00 : f32
    %17 = vector.broadcast %cst_12 : f32 to vector<8x32xf32>
    %18 = arith.maximumf %16, %17 : vector<8x32xf32>
    %c48 = arith.constant 48 : index
    %c0_13 = arith.constant 0 : index
    %19 = vector.load %arg2[%c48, %c0_13] : memref<192x32xbf16, #tpu.memory_space<vmem>>, vector<32x32xbf16>
    %20 = arith.truncf %18 : vector<8x32xf32> to vector<8x32xbf16>
    %cst_14 = arith.constant dense<0.000000e+00> : vector<8x32xf32>
    %21 = tpu.matmul %20, %19, %cst_14 {dimension_numbers = #tpu.dot_dimension_numbers<[1], [0], [0], [1], [0, 0, 1, 1], [], []>} : vector<8x32xbf16>, vector<32x32xbf16>, vector<8x32xf32> -> vector<8x32xf32>
    %c2 = arith.constant 2 : index
    %c0_15 = arith.constant 0 : index
    %22 = vector.load %arg3[%c2, %c0_15] : memref<8x32xf32, #tpu.memory_space<vmem>>, vector<1x32xf32>
    %23 = vector.broadcast %22 : vector<1x32xf32> to vector<8x32xf32>
    %24 = arith.addf %21, %23 : vector<8x32xf32>
    %cst_16 = arith.constant 0.000000e+00 : f32
    %25 = vector.broadcast %cst_16 : f32 to vector<8x32xf32>
    %26 = arith.maximumf %24, %25 : vector<8x32xf32>
    %c80 = arith.constant 80 : index
    %c0_17 = arith.constant 0 : index
    %27 = vector.load %arg2[%c80, %c0_17] : memref<192x32xbf16, #tpu.memory_space<vmem>>, vector<32x32xbf16>
    %28 = arith.truncf %26 : vector<8x32xf32> to vector<8x32xbf16>
    %cst_18 = arith.constant dense<0.000000e+00> : vector<8x32xf32>
    %29 = tpu.matmul %28, %27, %cst_18 {dimension_numbers = #tpu.dot_dimension_numbers<[1], [0], [0], [1], [0, 0, 1, 1], [], []>} : vector<8x32xbf16>, vector<32x32xbf16>, vector<8x32xf32> -> vector<8x32xf32>
    %c3 = arith.constant 3 : index
    %c0_19 = arith.constant 0 : index
    %30 = vector.load %arg3[%c3, %c0_19] : memref<8x32xf32, #tpu.memory_space<vmem>>, vector<1x32xf32>
    %31 = vector.broadcast %30 : vector<1x32xf32> to vector<8x32xf32>
    %32 = arith.addf %29, %31 : vector<8x32xf32>
    %33 = vector.extract_strided_slice %32 {offsets = [0, 0], sizes = [8, 16], strides = [1, 1]} : vector<8x32xf32> to vector<8x16xf32>
    %34 = vector.extract_strided_slice %32 {offsets = [0, 16], sizes = [8, 16], strides = [1, 1]} : vector<8x32xf32> to vector<8x16xf32>
    %cst_20 = arith.constant -3.000000e+01 : f32
    %cst_21 = arith.constant 2.000000e+01 : f32
    %35 = vector.broadcast %cst_20 : f32 to vector<8x16xf32>
    %36 = arith.maximumf %35, %34 : vector<8x16xf32>
    %37 = vector.broadcast %cst_21 : f32 to vector<8x16xf32>
    %38 = arith.minimumf %37, %36 : vector<8x16xf32>
    %cst_22 = arith.constant 5.000000e-01 : f32
    %39 = vector.broadcast %cst_22 : f32 to vector<8x16xf32>
    %40 = arith.mulf %39, %38 : vector<8x16xf32>
    %41 = math.exp %40 : vector<8x16xf32>
    %42 = arith.mulf %1, %41 : vector<8x16xf32>
    %43 = arith.addf %33, %42 : vector<8x16xf32>
    %c112 = arith.constant 112 : index
    %c0_23 = arith.constant 0 : index
    %44 = vector.load %arg2[%c112, %c0_23] : memref<192x32xbf16, #tpu.memory_space<vmem>>, vector<16x32xbf16>
    %45 = arith.truncf %43 : vector<8x16xf32> to vector<8x16xbf16>
    %cst_24 = arith.constant dense<0.000000e+00> : vector<8x32xf32>
    %46 = tpu.matmul %45, %44, %cst_24 {dimension_numbers = #tpu.dot_dimension_numbers<[1], [0], [0], [1], [0, 0, 1, 1], [], []>} : vector<8x16xbf16>, vector<16x32xbf16>, vector<8x32xf32> -> vector<8x32xf32>
    %c4 = arith.constant 4 : index
    %c0_25 = arith.constant 0 : index
    %47 = vector.load %arg3[%c4, %c0_25] : memref<8x32xf32, #tpu.memory_space<vmem>>, vector<1x32xf32>
    %48 = vector.broadcast %47 : vector<1x32xf32> to vector<8x32xf32>
    %49 = arith.addf %46, %48 : vector<8x32xf32>
    %cst_26 = arith.constant 0.000000e+00 : f32
    %50 = vector.broadcast %cst_26 : f32 to vector<8x32xf32>
    %51 = arith.maximumf %49, %50 : vector<8x32xf32>
    %c128 = arith.constant 128 : index
    %c0_27 = arith.constant 0 : index
    %52 = vector.load %arg2[%c128, %c0_27] : memref<192x32xbf16, #tpu.memory_space<vmem>>, vector<32x32xbf16>
    %53 = arith.truncf %51 : vector<8x32xf32> to vector<8x32xbf16>
    %cst_28 = arith.constant dense<0.000000e+00> : vector<8x32xf32>
    %54 = tpu.matmul %53, %52, %cst_28 {dimension_numbers = #tpu.dot_dimension_numbers<[1], [0], [0], [1], [0, 0, 1, 1], [], []>} : vector<8x32xbf16>, vector<32x32xbf16>, vector<8x32xf32> -> vector<8x32xf32>
    %c5 = arith.constant 5 : index
    %c0_29 = arith.constant 0 : index
    %55 = vector.load %arg3[%c5, %c0_29] : memref<8x32xf32, #tpu.memory_space<vmem>>, vector<1x32xf32>
    %56 = vector.broadcast %55 : vector<1x32xf32> to vector<8x32xf32>
    %57 = arith.addf %54, %56 : vector<8x32xf32>
    %cst_30 = arith.constant 0.000000e+00 : f32
    %58 = vector.broadcast %cst_30 : f32 to vector<8x32xf32>
    %59 = arith.maximumf %57, %58 : vector<8x32xf32>
    %c160 = arith.constant 160 : index
    %c0_31 = arith.constant 0 : index
    %60 = vector.load %arg2[%c160, %c0_31] : memref<192x32xbf16, #tpu.memory_space<vmem>>, vector<32x32xbf16>
    %61 = arith.truncf %59 : vector<8x32xf32> to vector<8x32xbf16>
    %cst_32 = arith.constant dense<0.000000e+00> : vector<8x32xf32>
    %62 = tpu.matmul %61, %60, %cst_32 {dimension_numbers = #tpu.dot_dimension_numbers<[1], [0], [0], [1], [0, 0, 1, 1], [], []>} : vector<8x32xbf16>, vector<32x32xbf16>, vector<8x32xf32> -> vector<8x32xf32>
    %c6 = arith.constant 6 : index
    %c0_33 = arith.constant 0 : index
    %63 = vector.load %arg3[%c6, %c0_33] : memref<8x32xf32, #tpu.memory_space<vmem>>, vector<1x32xf32>
    %64 = vector.broadcast %63 : vector<1x32xf32> to vector<8x32xf32>
    %65 = arith.addf %62, %64 : vector<8x32xf32>
    %66 = vector.extract_strided_slice %65 {offsets = [0, 0], sizes = [8, 9], strides = [1, 1]} : vector<8x32xf32> to vector<8x9xf32>
    %67 = tpu.iota {dimensions = array<i32: 1>} : vector<1x9xi32>
    %68 = arith.addf %66, %2 : vector<8x9xf32>
    %cst_34 = arith.constant 1.000000e+00 : f32
    %69 = vector.broadcast %cst_34 : f32 to vector<8x9xf32>
    %70 = arith.mulf %68, %69 : vector<8x9xf32>
    %false = arith.constant false
    %71 = vector.broadcast %false : i1 to vector<1x9xi1>
    %cst_35 = arith.constant 0.000000e+00 : f32
    %72 = vector.broadcast %cst_35 : f32 to vector<8x9xf32>
    %c1_i32 = arith.constant 1 : i32
    %73 = vector.broadcast %c1_i32 : i32 to vector<1x9xi32>
    %74 = arith.cmpi sge, %67, %73 : vector<1x9xi32>
    %c4_i32 = arith.constant 4 : i32
    %75 = vector.broadcast %c4_i32 : i32 to vector<1x9xi32>
    %76 = arith.cmpi slt, %67, %75 : vector<1x9xi32>
    %77 = arith.andi %74, %76 : vector<1x9xi1>
    %cst_36 = arith.constant 0xFF800000 : f32
    %78 = vector.shape_cast %77 : vector<1x9xi1> to vector<1x9xi1>
    %79 = vector.broadcast %78 : vector<1x9xi1> to vector<8x9xi1>
    %80 = vector.broadcast %cst_36 : f32 to vector<8x9xf32>
    %81 = arith.select %79, %70, %80 : vector<8x9xi1>, vector<8x9xf32>
    %cst_37 = arith.constant dense<0xFF800000> : vector<8xf32>
    %82 = vector.multi_reduction <maximumf>, %81, %cst_37 [1] : vector<8x9xf32> to vector<8xf32>
    %83 = vector.shape_cast %82 : vector<8xf32> to vector<8x1xf32>
    %84 = vector.broadcast %83 : vector<8x1xf32> to vector<8x9xf32>
    %85 = arith.subf %70, %84 : vector<8x9xf32>
    %cst_38 = arith.constant 0xFF800000 : f32
    %86 = vector.shape_cast %77 : vector<1x9xi1> to vector<1x9xi1>
    %87 = vector.broadcast %86 : vector<1x9xi1> to vector<8x9xi1>
    %88 = vector.broadcast %cst_38 : f32 to vector<8x9xf32>
    %89 = arith.select %87, %85, %88 : vector<8x9xi1>, vector<8x9xf32>
    %90 = math.exp %89 : vector<8x9xf32>
    %cst_39 = arith.constant dense<0.000000e+00> : vector<8xf32>
    %91 = vector.multi_reduction <add>, %90, %cst_39 [1] : vector<8x9xf32> to vector<8xf32>
    %92 = vector.shape_cast %91 : vector<8xf32> to vector<8x1xf32>
    %93 = tpu.reciprocal %92 {approx = true} : vector<8x1xf32> -> vector<8x1xf32>
    %94 = vector.broadcast %93 : vector<8x1xf32> to vector<8x9xf32>
    %95 = arith.mulf %90, %94 : vector<8x9xf32>
    %96 = arith.addf %72, %95 : vector<8x9xf32>
    %97 = arith.ori %71, %77 : vector<1x9xi1>
    %c5_i32 = arith.constant 5 : i32
    %98 = vector.broadcast %c5_i32 : i32 to vector<1x9xi32>
    %99 = arith.cmpi sge, %67, %98 : vector<1x9xi32>
    %c9_i32 = arith.constant 9 : i32
    %100 = vector.broadcast %c9_i32 : i32 to vector<1x9xi32>
    %101 = arith.cmpi slt, %67, %100 : vector<1x9xi32>
    %102 = arith.andi %99, %101 : vector<1x9xi1>
    %cst_40 = arith.constant 0xFF800000 : f32
    %103 = vector.shape_cast %102 : vector<1x9xi1> to vector<1x9xi1>
    %104 = vector.broadcast %103 : vector<1x9xi1> to vector<8x9xi1>
    %105 = vector.broadcast %cst_40 : f32 to vector<8x9xf32>
    %106 = arith.select %104, %70, %105 : vector<8x9xi1>, vector<8x9xf32>
    %cst_41 = arith.constant dense<0xFF800000> : vector<8xf32>
    %107 = vector.multi_reduction <maximumf>, %106, %cst_41 [1] : vector<8x9xf32> to vector<8xf32>
    %108 = vector.shape_cast %107 : vector<8xf32> to vector<8x1xf32>
    %109 = vector.broadcast %108 : vector<8x1xf32> to vector<8x9xf32>
    %110 = arith.subf %70, %109 : vector<8x9xf32>
    %cst_42 = arith.constant 0xFF800000 : f32
    %111 = vector.shape_cast %102 : vector<1x9xi1> to vector<1x9xi1>
    %112 = vector.broadcast %111 : vector<1x9xi1> to vector<8x9xi1>
    %113 = vector.broadcast %cst_42 : f32 to vector<8x9xf32>
    %114 = arith.select %112, %110, %113 : vector<8x9xi1>, vector<8x9xf32>
    %115 = math.exp %114 : vector<8x9xf32>
    %cst_43 = arith.constant dense<0.000000e+00> : vector<8xf32>
    %116 = vector.multi_reduction <add>, %115, %cst_43 [1] : vector<8x9xf32> to vector<8xf32>
    %117 = vector.shape_cast %116 : vector<8xf32> to vector<8x1xf32>
    %118 = tpu.reciprocal %117 {approx = true} : vector<8x1xf32> -> vector<8x1xf32>
    %119 = vector.broadcast %118 : vector<8x1xf32> to vector<8x9xf32>
    %120 = arith.mulf %115, %119 : vector<8x9xf32>
    %121 = arith.addf %96, %120 : vector<8x9xf32>
    %122 = arith.ori %97, %102 : vector<1x9xi1>
    %123 = math.tanh %66 : vector<8x9xf32>
    %124 = vector.shape_cast %122 : vector<1x9xi1> to vector<1x9xi1>
    %125 = vector.broadcast %124 : vector<1x9xi1> to vector<8x9xi1>
    %126 = arith.select %125, %121, %123 : vector<8x9xi1>, vector<8x9xf32>
    %127 = tpu.iota {dimensions = array<i32: 1>} : vector<1x32xi32>
    %c16_i32 = arith.constant 16 : i32
    %128 = vector.broadcast %c16_i32 : i32 to vector<1x32xi32>
    %129 = arith.cmpi sge, %127, %128 : vector<1x32xi32>
    %cst_44 = arith.constant -3.000000e+01 : f32
    %cst_45 = arith.constant 2.000000e+01 : f32
    %130 = vector.broadcast %cst_44 : f32 to vector<8x32xf32>
    %131 = arith.maximumf %130, %32 : vector<8x32xf32>
    %132 = vector.broadcast %cst_45 : f32 to vector<8x32xf32>
    %133 = arith.minimumf %132, %131 : vector<8x32xf32>
    %134 = vector.shape_cast %129 : vector<1x32xi1> to vector<1x32xi1>
    %135 = vector.broadcast %134 : vector<1x32xi1> to vector<8x32xi1>
    %136 = arith.select %135, %133, %32 : vector<8x32xi1>, vector<8x32xf32>
    %c0_46 = arith.constant 0 : index
    %c0_47 = arith.constant 0 : index
    %137 = vector.load %arg4[%c0_46, %c0_47] : memref<8x41xf32, #tpu.memory_space<vmem>>, vector<8x32xf32>
    tpu.vector_store %arg4[%c0_46, %c0_47], %136 {strides = array<i32>} : memref<8x41xf32, #tpu.memory_space<vmem>>, vector<8x32xf32>,
    %c0_48 = arith.constant 0 : index
    %c32_49 = arith.constant 32 : index
    %138 = vector.load %arg4[%c0_48, %c32_49] : memref<8x41xf32, #tpu.memory_space<vmem>>, vector<8x9xf32>
    tpu.vector_store %arg4[%c0_48, %c32_49], %126 {strides = array<i32>} : memref<8x41xf32, #tpu.memory_space<vmem>>, vector<8x9xf32>,
    return
  }
  func.func @transform_0(%arg0: i32) -> (i32, i32) {
    %c0_i32 = arith.constant 0 : i32
    %c0_i32_0 = arith.constant 0 : i32
    return %arg0, %c0_i32 : i32, i32
  }
  func.func @transform_1(%arg0: i32) -> (i32, i32) {
    %c0_i32 = arith.constant 0 : i32
    %c0_i32_0 = arith.constant 0 : i32
    %c0_i32_1 = arith.constant 0 : i32
    return %c0_i32, %c0_i32_0 : i32, i32
  }
  func.func @transform_2(%arg0: i32) -> (i32, i32) {
    %c0_i32 = arith.constant 0 : i32
    %c0_i32_0 = arith.constant 0 : i32
    %c0_i32_1 = arith.constant 0 : i32
    return %c0_i32, %c0_i32_0 : i32, i32
  }
  func.func @transform_3(%arg0: i32) -> (i32, i32) {
    %c0_i32 = arith.constant 0 : i32
    %c0_i32_0 = arith.constant 0 : i32
    return %arg0, %c0_i32 : i32, i32
  }
}

</mosaic_0001>

<bundles_post_ra>
// kernel: tpu_custom_call.1
= control target key start
LH: loop header
LB: loop body
LE: loop exit
PB: predicated region body
PF: predicated region fallthrough
CT: control target
= control target key end

     0   :  { %v699_v1 = vmov 0.0   ;;  %vm31_vm0 = vcmask 130048   ;;  %vm700_vm1 = vmmov 0   ;;  %s859_s0 = inlined_call_operand.vmem [shape: f32[8,48], index: 0, kind: input, shape index: {}]   ;;  %s860_s1 = inlined_call_operand.vmem [shape: bf16[192,32], index: 1, kind: input, shape index: {}]   ;;  %s861_s2 = inlined_call_operand.vmem [shape: f32[8,32], index: 2, kind: input, shape index: {}]   ;;  %s862_s3 = inlined_call_operand.hbm [shape: f32[8,41], index: 3, kind: output, shape index: {}]  }
   0x1   :  { %v653_v0 = vld [vmem:[%s860_s1] sm:$0xff]   ;;  %595 = vmatprep.subr.bf16.mxu0 %v699_v1  ;;  %601 = vmatprep.subr.bf16.mxu1 %v699_v1 }
   0x2   :  { %v732_v2 = vld [vmem:[%s859_s0] sm:$0xff]  ;;  %596 = vmatpush3.bf16.msra.mxu0 %v653_v0  ;;  %597 = vmatprep.mubr.msk.bf16.mxu0 %vm700_vm1, %v699_v1 }
   0x3   :  { %v19_v3 = vpack.c.bf16 %v732_v2, %v732_v2  ;;  %605 = vmatprep.mubr.msk.bf16.mxu1 %vm700_vm1, %v699_v1  ;;  %609 = vmatprep.subr.bf16.mxu0 %v699_v1 }
   0x5   :  { %598 = vmatmul.mubr.msk.bf16.vlgmr.msra.gmra.mxu0 %vm31_vm0, %v19_v3 }
   0x6   :  { %613 = vmatprep.mubr.msk.bf16.mxu0 %vm700_vm1, %v699_v1 }
   0x7   :  { %8 = vsyncpa [#allocation3], 0  ;;  %v654_v4 = vld [vmem:[%s860_s1 + $0x10] sm:$0xff]   ;;  %v655_v5 = vld [vmem:[%s860_s1 + $0x8] sm:$0xff]   ;;  %vm98_vm2 = vcmask 261120   ;;  %v474_v35 = vlaneseq  ;;  %s701_s12 = smov 112  }
   0x8   :  { %602 = vmatpush3.bf16.msra.mxu1 %v654_v4  ;;  %v656_v6 = vld [vmem:[%s860_s1 + $0x20] sm:$0xff]   ;;  %v657_v15 = vld [vmem:[%s860_s1 + $0x18] sm:$0xff]   ;;  %v658_v16 = vld [vmem:[%s860_s1 + $0x30] sm:$0xff]   ;;  %s702_s20 = smov 96   ;;  %vm487_vm9 = vcmask 72704   ;;  %vm534_vm12 = vcmask 335104  }
   0x9   :  { %603 = vmatprep.subr.bf16.mxu1 %v699_v1  ;;  %610 = vmatpush3.bf16.msra.mxu0 %v656_v6  ;;  %v550_v7 = vld [vmem:[%s861_s2] ss:$0 sm:$0xff]  ;;  %v553_v17 = vld [vmem:[%s861_s2 + $0x1] ss:$0 sm:$0xff]  ;;  %v659_v25 = vld [vmem:[%s860_s1 + $0x28] sm:$0xff]   ;;  %v794_v38 = vand.u32 127, %v474_v35 }
   0xa   :  { %611 = vmatprep.subr.bf16.mxu0 %v699_v1  ;;  %v557_v26 = vld [vmem:[%s861_s2 + $0x2] ss:$0 sm:$0xff]  ;;  %v660_v34 = vld [vmem:[%s860_s1 + $0x38] sm:$0xff]   ;;  %v561_v36 = vld [vmem:[%s861_s2 + $0x3] ss:$0 sm:$0xff] }
   0xb   :  { %vm525_vm3 = vcmp.ge.s32.totalorder %v794_v38, 16  ;;  %v661_v48 = vld [vmem:[%s860_s1 + $0x48] sm:$0xff]   ;;  %v662_v54 = vld [vmem:[%s860_s1 + $0x40] sm:$0xff]   ;;  %v663_v55 = vld [vmem:[%s860_s1 + $0x58] sm:$0xff]   ;;  %vm481_vm4 = vcmp.ge.s32.totalorder %v794_v38, 1  ;;  %vm482_vm5 = vcmp.lt.s32.totalorder %v794_v38, 4 }
   0xc   :  { %604 = vmatpush3.bf16.msra.mxu1 %v655_v5  ;;  %v565_v56 = vld [vmem:[%s861_s2 + $0x4] ss:$0 sm:$0xff]  ;;  %v664_v0 = vld [vmem:[%s860_s1 + $0x50] sm:$0xff]   ;;  %vm501_vm6 = vcmp.ge.s32.totalorder %v794_v38, 5  ;;  %vm502_vm7 = vcmp.lt.s32.totalorder %v794_v38, 9  ;;  %vm832_vm8 = vmand %vm481_vm4, %vm482_vm5  ;;  %s703_s1 = smov 32  }
   0xd   :  { %617 = vmatprep.subr.bf16.mxu1 %v699_v1  ;;  %612 = vmatpush3.bf16.msra.mxu0 %v657_v15  ;;  %vm836_vm10 = vmand %vm501_vm6, %vm502_vm7 }
   0xe   :  { %625 = vmatprep.subr.bf16.mxu0 %v699_v1  ;;  %vm520_vm11 = vmor %vm832_vm8, %vm836_vm10 }
  0xc5   :  { %v69_v8 = vpop.f32.mrf.mxu0 }
  0xc6   :  { %v70_v9 = vadd.f32 %v550_v7, %v69_v8 }
  0xc7   :  { %v599_v10 = vpop.f32.mrf.mxu0 }
  0xc8   :  { %v75_v11 = vmax.f32 %v70_v9, 0.0  ;;  %v572_v10 = vld [vmem:[%s861_s2 + $0x6] ss:$0 sm:$0xff] }
  0xc9   :  { %v72_v12 = vpop.f32.mrf.mxu0 }
  0xca   :  { %v80_v13 = vpack.c.bf16 %v75_v11, %v75_v11 }
  0xcb   :  { %v600_v14 = vpop.f32.mrf.mxu0 }
  0xcc   :  { %606 = vmatmul.mubr.msk.bf16.vlgmr.msra.gmra.mxu1 %vm98_vm2, %v80_v13 }
  0xcd   :  { %621 = vmatprep.mubr.msk.bf16.mxu1 %vm700_vm1, %v699_v1  ;;  %618 = vmatpush3.bf16.msra.mxu1 %v658_v16 }
  0xce   :  { %619 = vmatprep.subr.bf16.mxu1 %v699_v1 }
  0xd1   :  { %620 = vmatpush3.bf16.msra.mxu1 %v659_v25 }
  0xd2   :  { %631 = vmatprep.subr.bf16.mxu1 %v699_v1 }
 0x18c   :  { %v136_v18 = vpop.f32.mrf.mxu1 }
 0x18d   :  { %v137_v19 = vadd.f32 %v553_v17, %v136_v18 }
 0x18e   :  { %v607_v20 = vpop.f32.mrf.mxu1 }
 0x18f   :  { %v142_v21 = vmax.f32 %v137_v19, 0.0 }
 0x190   :  { %v139_v22 = vpop.f32.mrf.mxu1 }
 0x191   :  { %v147_v23 = vpack.c.bf16 %v142_v21, %v142_v21 }
 0x192   :  { %v608_v24 = vpop.f32.mrf.mxu1 }
 0x193   :  { %614 = vmatmul.mubr.msk.bf16.vlgmr.msra.gmra.mxu0 %vm98_vm2, %v147_v23 }
 0x194   :  { %627 = vmatprep.mubr.msk.bf16.mxu0 %vm700_vm1, %v699_v1  ;;  %626 = vmatpush3.bf16.msra.mxu0 %v660_v34 }
 0x195   :  { %639 = vmatprep.subr.bf16.mxu0 %v699_v1 }
 0x253   :  { %v202_v27 = vpop.f32.mrf.mxu0 }
 0x254   :  { %v203_v28 = vadd.f32 %v557_v26, %v202_v27 }
 0x255   :  { %v615_v29 = vpop.f32.mrf.mxu0 }
 0x256   :  { %v208_v30 = vmax.f32 %v203_v28, 0.0 }
 0x257   :  { %v205_v31 = vpop.f32.mrf.mxu0 }
 0x258   :  { %v213_v32 = vpack.c.bf16 %v208_v30, %v208_v30 }
 0x259   :  { %v616_v33 = vpop.f32.mrf.mxu0 }
 0x25a   :  { %622 = vmatmul.mubr.msk.bf16.vlgmr.msra.gmra.mxu1 %vm98_vm2, %v213_v32 }
 0x25b   :  { %635 = vmatprep.mubr.msk.bf16.mxu1 %vm700_vm1, %v699_v1  ;;  %632 = vmatpush3.bf16.msra.mxu1 %v661_v48 }
 0x25c   :  { %633 = vmatprep.subr.bf16.mxu1 %v699_v1 }
 0x25f   :  { %634 = vmatpush3.bf16.msra.mxu1 %v662_v54 }
 0x31a   :  { %v268_v37 = vpop.f32.mrf.mxu1 }
 0x31b   :  { %v269_v39 = vadd.f32 %v561_v36, %v268_v37 }
 0x31c   :  { %v623_v40 = vpop.f32.mrf.mxu1 }
 0x31d   :  { %v274_v41 = vmax.f32 %v269_v39, -30.0 }
 0x31e   :  { %v271_v42 = vpop.f32.mrf.mxu1 }
 0x31f   :  { %v275_v43 = vmin.f32 %v274_v41, 20.0 }
 0x320   :  { %v624_v44 = vpop.f32.mrf.mxu1 }
 0x321   :  { %v276_v45 = vmul.f32 0.5, %v275_v43  ;;  %v528_v46 = vsel %vm525_vm3, %v275_v43, %v269_v39 }
 0x322   :  { %529 = vst.msk [vmem:[#allocation2] sm:$0xff] %vm98_vm2, %v528_v46 }
 0x323   :  { %v277_v47 = vmul.f32 1.442695, %v276_v45 }
 0x325   :  { %665 = vpow2.f32 %v277_v47 }
 0x332   :  { %v666_v49 = vpop.eup %665 }
 0x333   :  { %v279_v50 = vmul.f32 %v666_v49, %v732_v2 }
 0x335   :  { %281 = vrot.lane.b32.xlu0 %v279_v50, %s701_s12 }
 0x339   :  { %477 = vrot.lane.b32.xlu0 %v732_v2, %s702_s20 }
 0x3a7   :  { %v282_v51 = vpop.permute.xlu0 %281 }
 0x3a8   :  { %v284_v52 = vadd.f32 %v282_v51, %v269_v39 }
 0x3aa   :  { %v287_v53 = vpack.c.bf16 %v284_v52, %v284_v52 }
 0x3ab   :  { %v478_v11 = vpop.permute.xlu0 %477 }
 0x3ac   :  { %628 = vmatmul.mubr.msk.bf16.vlgmr.msra.gmra.mxu0 %vm31_vm0, %v287_v53 }
 0x3ad   :  { %643 = vmatprep.mubr.msk.bf16.mxu0 %vm700_vm1, %v699_v1  ;;  %640 = vmatpush3.bf16.msra.mxu0 %v663_v55 }
 0x3ae   :  { %641 = vmatprep.subr.bf16.mxu0 %v699_v1  ;;  %v568_v1 = vld [vmem:[%s861_s2 + $0x5] ss:$0 sm:$0xff]  ;;  %s704_s2 = smov [#allocation2]  }
 0x3af   :  { %s542_s25 = sshll.u32 %s704_s2, 4  ;;  %s543_s25 = int_to_ptr.vmem [resolvable:$true] %s542_s25 }
 0x3b0   :  { %s677_s26 = scalar_lea.vmem %s543_s25, 128  ;;  %p682_p1 = scmp.lt.s32.totalorder %s543_s25, %s543_s25 }
 0x3b1   :  { %642 = vmatpush3.bf16.msra.mxu0 %v664_v0  ;;  %p678_p0 = scmp.ne.s32.totalorder %s543_s25, %s677_s26  ;;  %p683_p2 = scmp.lt.s32.totalorder %s677_s26, %s677_s26 }
 0x3b3   :  { %p684_p3 = por %p683_p2, %p682_p1 }
 0x3b5   :  { %p685_p4 = pnand %p684_p3, %p678_p0 }
 0x46c   :  { %v336_v57 = vpop.f32.mrf.mxu0 }
 0x46d   :  { %v337_v58 = vadd.f32 %v565_v56, %v336_v57 }
 0x46e   :  { %v629_v59 = vpop.f32.mrf.mxu0 }
 0x46f   :  { %v342_v60 = vmax.f32 %v337_v58, 0.0 }
 0x470   :  { %v339_v61 = vpop.f32.mrf.mxu0 }
 0x471   :  { %v347_v62 = vpack.c.bf16 %v342_v60, %v342_v60 }
 0x472   :  { %v630_v63 = vpop.f32.mrf.mxu0 }
 0x473   :  { %636 = vmatmul.mubr.msk.bf16.vlgmr.msra.gmra.mxu1 %vm98_vm2, %v347_v62 }
 0x533   :  { %v402_v3 = vpop.f32.mrf.mxu1 }
 0x534   :  { %v403_v4 = vadd.f32 %v568_v1, %v402_v3 }
 0x535   :  { %v637_v5 = vpop.f32.mrf.mxu1 }
 0x536   :  { %v408_v6 = vmax.f32 %v403_v4, 0.0 }
 0x537   :  { %v405_v7 = vpop.f32.mrf.mxu1 }
 0x538   :  { %v413_v8 = vpack.c.bf16 %v408_v6, %v408_v6 }
 0x539   :  { %v638_v9 = vpop.f32.mrf.mxu1 }
 0x53a   :  { %644 = vmatmul.mubr.msk.bf16.vlgmr.msra.gmra.mxu0 %vm98_vm2, %v413_v8 }
 0x5fa   :  { %v468_v2 = vpop.f32.mrf.mxu0 }
 0x5fb   :  { %v469_v12 = vadd.f32 %v572_v10, %v468_v2 }
 0x5fc   :  { %v645_v13 = vpop.f32.mrf.mxu0 }
 0x5fd   :  { %v480_v15 = vadd.f32 %v478_v11, %v469_v12 }
 0x5fe   :  { %v471_v16 = vpop.f32.mrf.mxu0 }
 0x5ff   :  { %v486_v18 = vsel %vm832_vm8, %v480_v15, -inf  ;;  %v506_v21 = vsel %vm836_vm10, %v480_v15, -inf }
 0x600   :  { %v646_v19 = vpop.f32.mrf.mxu0  ;;  %v488_v20 = vsel %vm487_vm9, %v486_v18, -inf  ;;  %v507_v22 = vsel %vm487_vm9, %v506_v21, -inf }
 0x601   :  { %489 = vmax.xlane.f32.xlu1 %v488_v20 }
 0x605   :  { %508 = vmax.xlane.f32.xlu1 %v507_v22 }
 0x68a   :  { %v490_v23 = vpop.xlane.xlu1 %489 }
 0x68b   :  { %v491_v24 = vsub.f32 %v480_v15, %v490_v23 }
 0x68d   :  { %v492_v25 = vsel %vm832_vm8, %v491_v24, -inf }
 0x68e   :  { %v493_v26 = vmul.f32 1.442695, %v492_v25  ;;  %v509_v27 = vpop.xlane.xlu1 %508 }
 0x68f   :  { %v510_v28 = vsub.f32 %v480_v15, %v509_v27 }
 0x690   :  { %667 = vpow2.f32 %v493_v26 }
 0x691   :  { %v511_v29 = vsel %vm836_vm10, %v510_v28, -inf }
 0x692   :  { %v512_v30 = vmul.f32 1.442695, %v511_v29 }
 0x694   :  { %669 = vpow2.f32 %v512_v30 }
 0x69d   :  { %v668_v31 = vpop.eup %667 }
 0x69e   :  { %v495_v32 = vsel %vm487_vm9, %v668_v31, 0.0 }
 0x69f   :  { %496 = vadd.xlane.f32.xlu0 %v495_v32 }
 0x6a1   :  { %v670_v33 = vpop.eup %669 }
 0x6a2   :  { %v514_v34 = vsel %vm487_vm9, %v670_v33, 0.0 }
 0x6a3   :  { %515 = vadd.xlane.f32.xlu1 %v514_v34 }
 0x728   :  { %v497_v35 = vpop.xlane.xlu0 %496 }
 0x729   :  { %671 = vrcp.f32 %v497_v35 }
 0x72c   :  { %v516_v36 = vpop.xlane.xlu1 %515 }
 0x72d   :  { %673 = vrcp.f32 %v516_v36 }
 0x72e   :  { %675 = vtanh.f32 %v469_v12 }
 0x736   :  { %v672_v37 = vpop.eup %671 }
 0x737   :  { %v499_v39 = vmul.f32 %v672_v37, %v668_v31 }
 0x73a   :  { %v674_v38 = vpop.eup %673 }
 0x73b   :  { %v518_v40 = vmul.f32 %v674_v38, %v670_v33  ;;  %v676_v42 = vpop.eup %675 }
 0x73d   :  { %v519_v41 = vadd.f32 %v518_v40, %v499_v39 }
 0x73f   :  { %v524_v43 = vsel %vm520_vm11, %v519_v41, %v676_v42 }
 0x740   :  { %531 = vrot.lane.b32.xlu1 %v524_v43, %s703_s1 }
 0x7b2   :  { %v532_v44 = vpop.permute.xlu1 %531 }
 0x7b3   :  { %535 = vst.msk [vmem:[#allocation2] sm:$0xff] %vm534_vm12, %v532_v44 }
 0x7b4   :  { %688 = shalt.err (!%p685_p4)
}
 0x7b5   :  { %545 = dma.vmem_to_hbm [thread:$0]  %s543_s25, 128, %s862_s3, [#allocation3]  }
 0x7b6   :  { %697 = dma.done.wait [#allocation3], 128  }
 0x7b7   :  { %698 = vsyncadd [#allocation3], 4294967168 }
 0x7b8   :  { %549 = vsyncpa [#allocation3], 1 }

</bundles_post_ra>
